<compile_context>
chip_gen: v7x
topology: tpu7x:2x2x1
jax: 0.10.0
libtpu: 0.0.40
codegen_flags: <defaults>
</compile_context>

<pallas_src>
import functools

import jax
import jax.numpy as jnp
from jax.experimental import pallas as pl
from jax.experimental.pallas import tpu as pltpu


def _round_up(x, m):
    return ((x + m - 1) // m) * m


def _cdiv(a, b):
    return -(-a // b)


def _vmem_capacity_bytes():
    try:
        return int(pltpu.get_tpu_info().vmem_capacity_bytes)
    except Exception:
        return 64 << 20  # conservative fallback (v7x per-core VMEM)


def _single_buffer_kwargs():
    """pipeline_mode=Buffered(1) kwargs for grid-invariant operands, if supported."""
    try:
        pl.BlockSpec((8, 128), lambda i, j: (0, 0), pipeline_mode=pl.Buffered(1))
        return dict(pipeline_mode=pl.Buffered(1))
    except Exception:
        return {}


def _pick_th(hidden, input_size, nc_pad, w_itemsize, weight_budget):
    """Hidden (reduction) tile: full hidden if the weights fit, else a
    lane-aligned divisor of hidden (partial hidden blocks would feed stale
    VMEM into the accumulation, so only even splits are allowed)."""
    per_col = (input_size + nc_pad) * w_itemsize  # weight bytes per hidden col
    if hidden * per_col <= weight_budget or hidden % 128 != 0:
        return hidden
    for th in (4096, 2048, 1024, 512, 256, 128):
        if hidden % th == 0 and 2 * th * per_col <= weight_budget:
            return th
    return 128


def _pick_bm(B, x_itemsize, out_itemsize, input_size, nc_pad, resident_bytes,
             vmem_budget, bm_max=512):
    """Largest VMEM-fitting batch tile (16-row granularity)."""
    # per-row VMEM: double-buffered x tile + double-buffered out tile + f32 acc
    per_row = 2 * input_size * x_itemsize + 2 * nc_pad * out_itemsize + nc_pad * 4
    avail = vmem_budget - resident_bytes - (2 << 20)
    bm = bm_max
    if avail > 0:
        bm = min(bm, max(16, int(avail // per_row)))
    else:
        bm = 16
    bm = max(16, (bm // 16) * 16)
    # Keep >=2 grid steps when the batch allows it so the "parallel" batch
    # axis can be sharded across both v7x TensorCores (extra ~0.35us step
    # overhead is negligible on single-core v5e/v6e).
    if B > 16:
        bm = min(bm, _round_up(_cdiv(B, 2), 16))
    if B <= bm:
        bm = B  # single full-extent block (always layout-legal)
    return bm


def classifier_kernel(x_ref, w1_ref, b1_ref, w2_ref, b2_ref, o_ref, acc_ref):
    # x_ref : (bm, input_size)   native dtype (cast to bf16 in-kernel)
    # w1_ref: (input_size, th)   compute dtype (bf16)
    # b1_ref: (1, th)            f32
    # w2_ref: (th, nc_pad)       compute dtype
    # b2_ref: (1, nc_pad)        f32
    # o_ref : (bm, nc_pad)       out dtype, nc_pad % 128 == 0 (lane-dense)
    # acc_ref: (bm, nc_pad)      f32 accumulator over the hidden tiles
    j = pl.program_id(1)

    @pl.when(j == 0)
    def _():
        acc_ref[...] = jnp.zeros_like(acc_ref)

    x = x_ref[...].astype(w1_ref.dtype)            # cast on VPU, hidden by MXU
    h = jnp.dot(x, w1_ref[...], preferred_element_type=jnp.float32)
    h = jnp.tanh(h + b1_ref[...])                  # bias + tanh in f32 (EUP)
    acc_ref[...] += jnp.dot(h.astype(w2_ref.dtype), w2_ref[...],
                            preferred_element_type=jnp.float32)

    @pl.when(j == pl.num_programs(1) - 1)
    def _():
        o_ref[...] = (acc_ref[...] + b2_ref[...]).astype(o_ref.dtype)


def pack_params(w1, b1, w2, b2, *, compute_dtype=jnp.bfloat16):
    """One-time weight packing: pad num_class up to a lane-dense multiple of
    128, cast weights to the MXU compute dtype, keep biases in f32 (1, N).
    Weights are stored (in_features, out_features)."""
    input_size, hidden = w1.shape
    num_class = w2.shape[-1]
    nc_pad = _round_up(max(num_class, 1), 128)
    b1 = jnp.asarray(b1, jnp.float32).reshape(1, hidden)
    b2 = jnp.asarray(b2, jnp.float32).reshape(1, num_class)
    if nc_pad != num_class:
        w2 = jnp.pad(w2, ((0, 0), (0, nc_pad - num_class)))
        b2 = jnp.pad(b2, ((0, 0), (0, nc_pad - num_class)))
    return dict(w1=w1.astype(compute_dtype), b1=b1,
                w2=w2.astype(compute_dtype), b2=b2,
                num_class=num_class)


def classifier_forward(x, packed, *, bm_max=512, out_dtype=None,
                       return_padded=False, single_buffer_weights=True):
    """y = tanh(x @ w1 + b1) @ w2 + b2 with weights from `pack_params`.

    Note: MXU operands are bf16 (intentional precision loss vs f32 PyTorch);
    bias-add / tanh / accumulation stay in f32.
    """
    w1, b1, w2, b2 = packed["w1"], packed["b1"], packed["w2"], packed["b2"]
    num_class = packed["num_class"]
    B, input_size = x.shape
    hidden = w1.shape[1]
    nc_pad = w2.shape[1]
    out_dtype = x.dtype if out_dtype is None else out_dtype

    x_isz = jnp.dtype(x.dtype).itemsize
    w_isz = jnp.dtype(w1.dtype).itemsize
    o_isz = jnp.dtype(out_dtype).itemsize

    capacity = _vmem_capacity_bytes()
    vmem_budget = int(0.65 * capacity)

    # ---- hidden (reduction) tiling ----------------------------------------
    th = _pick_th(hidden, input_size, nc_pad, w_isz, vmem_budget // 2)
    n_hidden = hidden // th

    single_buf = _single_buffer_kwargs() if single_buffer_weights else {}
    w_kwargs = single_buf if n_hidden == 1 else {}   # tiled weights need 2 bufs
    b2_kwargs = single_buf                           # b2 is always grid-invariant
    wmult = 1 if (n_hidden == 1 and w_kwargs) else 2
    resident = (wmult * (input_size * th + th * nc_pad) * w_isz
                + 2 * (th + nc_pad) * 4)

    # ---- batch tiling -------------------------------------------------------
    bm = _pick_bm(B, x_isz, o_isz, input_size, nc_pad, resident, vmem_budget,
                  bm_max=bm_max)
    grid = (_cdiv(B, bm), n_hidden)

    needed = (resident
              + 2 * bm * input_size * x_isz    # double-buffered x tiles
              + 2 * bm * nc_pad * o_isz        # double-buffered out tiles
              + bm * nc_pad * 4)               # f32 accumulator scratch
    vmem_limit = int(min(max(needed + (4 << 20), 32 << 20),
                         int(0.75 * capacity)))

    cost = pl.CostEstimate(
        flops=2 * B * hidden * (input_size + nc_pad),
        transcendentals=B * hidden,
        bytes_accessed=(B * input_size * x_isz
                        + (input_size * hidden + hidden * nc_pad) * w_isz
                        + (hidden + nc_pad) * 4
                        + B * nc_pad * o_isz),
    )

    out = pl.pallas_call(
        classifier_kernel,
        out_shape=jax.ShapeDtypeStruct((B, nc_pad), out_dtype),
        grid_spec=pltpu.PrefetchScalarGridSpec(
            num_scalar_prefetch=0,
            grid=grid,
            in_specs=[
                pl.BlockSpec((bm, input_size), lambda i, j: (i, 0)),            # x
                pl.BlockSpec((input_size, th), lambda i, j: (0, j), **w_kwargs),  # w1
                pl.BlockSpec((1, th),          lambda i, j: (0, j), **w_kwargs),  # b1
                pl.BlockSpec((th, nc_pad),     lambda i, j: (j, 0), **w_kwargs),  # w2
                pl.BlockSpec((1, nc_pad),      lambda i, j: (0, 0), **b2_kwargs),  # b2
            ],
            out_specs=pl.BlockSpec((bm, nc_pad), lambda i, j: (i, 0)),
            scratch_shapes=[pltpu.VMEM((bm, nc_pad), jnp.float32)],
        ),
        compiler_params=pltpu.CompilerParams(
            dimension_semantics=("parallel", "arbitrary"),
            vmem_limit_bytes=vmem_limit,
        ),
        cost_estimate=cost,
    )(x, w1, b1, w2, b2)

    if return_padded:
        return out
    return out[:, :num_class]   # strip lane padding on the class dim only


def init_params(key, input_size, hidden_size, num_class, dtype=jnp.float32):
    """Deterministic init mimicking PyTorch Linear default (uniform +-1/sqrt(fan_in))."""
    k1, k2, k3, k4 = jax.random.split(key, 4)
    lim1 = 1.0 / (input_size ** 0.5)
    lim2 = 1.0 / (hidden_size ** 0.5)
    # stored as (in, out) == transpose of PyTorch's (out, in)
    w1 = jax.random.uniform(k1, (input_size, hidden_size), dtype, -lim1, lim1)
    b1 = jax.random.uniform(k2, (1, hidden_size), dtype, -lim1, lim1)
    w2 = jax.random.uniform(k3, (hidden_size, num_class), dtype, -lim2, lim2)
    b2 = jax.random.uniform(k4, (1, num_class), dtype, -lim2, lim2)
    return w1, b1, w2, b2


if __name__ == "__main__":
    key = jax.random.PRNGKey(0)
    batch, input_size, hidden_size, num_class = 16, 32, 32, 8

    kx, kp = jax.random.split(key)
    x = jax.random.normal(kx, (batch, input_size), jnp.float32)
    w1, b1, w2, b2 = init_params(kp, input_size, hidden_size, num_class)

    # One-time weight packing (pad num_class -> 128, cast weights to bf16).
    packed = pack_params(w1, b1, w2, b2)

    def run(single_buffer):
        fwd = jax.jit(functools.partial(classifier_forward, packed=packed,
                                        single_buffer_weights=single_buffer))
        return jax.block_until_ready(fwd(x))

    try:
        out = run(True)
    except Exception:
        # Fallback: if this jax rejects pipeline_mode=Buffered on a top-level
        # BlockSpec at lowering time, rerun with double-buffered weights.
        out = run(False)

    # Reference mimicking the kernel's bf16-operand / f32-accumulate path.
    f32 = jnp.float32
    xc = x.astype(jnp.bfloat16).astype(f32)
    w1c = w1.astype(jnp.bfloat16).astype(f32)
    w2c = w2.astype(jnp.bfloat16).astype(f32)
    h_ref = jnp.tanh(xc @ w1c + b1)
    ref = h_ref.astype(jnp.bfloat16).astype(f32) @ w2c + b2

    assert out.shape == (batch, num_class)
    assert jnp.allclose(out, ref, atol=2e-3, rtol=2e-3), \
        float(jnp.max(jnp.abs(out - ref)))

    # Sanity vs the pure-f32 PyTorch-equivalent forward (loose: bf16 operands).
    ref_f32 = jnp.tanh(x @ w1 + b1) @ w2 + b2
    assert jnp.allclose(out, ref_f32, atol=5e-2, rtol=5e-2)

    print("KERNEL_OK")
</pallas_src>

<mosaic_0001>
module attributes {stable_mosaic.version = 11 : i64} {
  func.func @classifier_kernel(%arg0: i32, %arg1: i32, %arg2: memref<16x32xf32, #tpu.memory_space<vmem>>, %arg3: memref<32x32xbf16, #tpu.memory_space<vmem>>, %arg4: memref<1x32xf32, #tpu.memory_space<vmem>>, %arg5: memref<32x128xbf16, #tpu.memory_space<vmem>>, %arg6: memref<1x128xf32, #tpu.memory_space<vmem>>, %arg7: memref<16x128xf32, #tpu.memory_space<vmem>>, %arg8: memref<16x128xf32, #tpu.memory_space<vmem>>) attributes {dimension_semantics = [#tpu.dimension_semantics<parallel>, #tpu.dimension_semantics<arbitrary>], iteration_bounds = array<i64: 1, 1>, scalar_prefetch = 0 : i64, scratch_operands = 1 : i64, tpu.core_type = #tpu.core_type<tc>, window_params = [{transform_indices = @transform_0, window_bounds = array<i64: 16, 32>}, {pipeline_mode = #tpu.pipeline_mode<synchronous>, transform_indices = @transform_1, window_bounds = array<i64: 32, 32>}, {pipeline_mode = #tpu.pipeline_mode<synchronous>, transform_indices = @transform_2, window_bounds = array<i64: 1, 32>}, {pipeline_mode = #tpu.pipeline_mode<synchronous>, transform_indices = @transform_3, window_bounds = array<i64: 32, 128>}, {pipeline_mode = #tpu.pipeline_mode<synchronous>, transform_indices = @transform_4, window_bounds = array<i64: 1, 128>}, {transform_indices = @transform_5, window_bounds = array<i64: 16, 128>}]} {
    %c0_i32 = arith.constant 0 : i32
    %0 = arith.cmpi eq, %arg1, %c0_i32 : i32
    %1 = arith.extui %0 : i1 to i32
    %c0_i32_0 = arith.constant 0 : i32
    %2 = arith.cmpi ne, %1, %c0_i32_0 : i32
    scf.if %2 {
      %cst_15 = arith.constant 0.000000e+00 : f32
      %20 = vector.broadcast %cst_15 : f32 to vector<16x128xf32>
      %c0_16 = arith.constant 0 : index
      %c0_17 = arith.constant 0 : index
      %21 = vector.load %arg8[%c0_16, %c0_17] : memref<16x128xf32, #tpu.memory_space<vmem>>, vector<16x128xf32>
      tpu.vector_store %arg8[%c0_16, %c0_17], %20 {strides = array<i32>} : memref<16x128xf32, #tpu.memory_space<vmem>>, vector<16x128xf32>,
    } else {
    }
    %c0 = arith.constant 0 : index
    %c0_1 = arith.constant 0 : index
    %3 = vector.load %arg2[%c0, %c0_1] : memref<16x32xf32, #tpu.memory_space<vmem>>, vector<16x32xf32>
    %4 = arith.truncf %3 : vector<16x32xf32> to vector<16x32xbf16>
    %c0_2 = arith.constant 0 : index
    %c0_3 = arith.constant 0 : index
    %5 = vector.load %arg3[%c0_2, %c0_3] : memref<32x32xbf16, #tpu.memory_space<vmem>>, vector<32x32xbf16>
    %cst = arith.constant dense<0.000000e+00> : vector<16x32xf32>
    %6 = tpu.matmul %4, %5, %cst {dimension_numbers = #tpu.dot_dimension_numbers<[1], [0], [0], [1], [0, 0, 1, 1], [], []>} : vector<16x32xbf16>, vector<32x32xbf16>, vector<16x32xf32> -> vector<16x32xf32>
    %c0_4 = arith.constant 0 : index
    %c0_5 = arith.constant 0 : index
    %7 = vector.load %arg4[%c0_4, %c0_5] : memref<1x32xf32, #tpu.memory_space<vmem>>, vector<1x32xf32>
    %8 = vector.broadcast %7 : vector<1x32xf32> to vector<16x32xf32>
    %9 = arith.addf %6, %8 : vector<16x32xf32>
    %10 = math.tanh %9 : vector<16x32xf32>
    %c0_6 = arith.constant 0 : index
    %c0_7 = arith.constant 0 : index
    %11 = vector.load %arg8[%c0_6, %c0_7] : memref<16x128xf32, #tpu.memory_space<vmem>>, vector<16x128xf32>
    %12 = arith.truncf %10 : vector<16x32xf32> to vector<16x32xbf16>
    %c0_8 = arith.constant 0 : index
    %c0_9 = arith.constant 0 : index
    %13 = vector.load %arg5[%c0_8, %c0_9] : memref<32x128xbf16, #tpu.memory_space<vmem>>, vector<32x128xbf16>
    %cst_10 = arith.constant dense<0.000000e+00> : vector<16x128xf32>
    %14 = tpu.matmul %12, %13, %cst_10 {dimension_numbers = #tpu.dot_dimension_numbers<[1], [0], [0], [1], [0, 0, 1, 1], [], []>} : vector<16x32xbf16>, vector<32x128xbf16>, vector<16x128xf32> -> vector<16x128xf32>
    %15 = arith.addf %11, %14 : vector<16x128xf32>
    %c0_11 = arith.constant 0 : index
    %c0_12 = arith.constant 0 : index
    %16 = vector.load %arg8[%c0_11, %c0_12] : memref<16x128xf32, #tpu.memory_space<vmem>>, vector<16x128xf32>
    tpu.vector_store %arg8[%c0_11, %c0_12], %15 {strides = array<i32>} : memref<16x128xf32, #tpu.memory_space<vmem>>, vector<16x128xf32>,
    %c0_i32_13 = arith.constant 0 : i32
    %17 = arith.cmpi eq, %arg1, %c0_i32_13 : i32
    %18 = arith.extui %17 : i1 to i32
    %c0_i32_14 = arith.constant 0 : i32
    %19 = arith.cmpi ne, %18, %c0_i32_14 : i32
    scf.if %19 {
      %c0_15 = arith.constant 0 : index
      %c0_16 = arith.constant 0 : index
      %20 = vector.load %arg8[%c0_15, %c0_16] : memref<16x128xf32, #tpu.memory_space<vmem>>, vector<16x128xf32>
      %c0_17 = arith.constant 0 : index
      %c0_18 = arith.constant 0 : index
      %21 = vector.load %arg6[%c0_17, %c0_18] : memref<1x128xf32, #tpu.memory_space<vmem>>, vector<1x128xf32>
      %22 = vector.broadcast %21 : vector<1x128xf32> to vector<16x128xf32>
      %23 = arith.addf %20, %22 : vector<16x128xf32>
      %c0_19 = arith.constant 0 : index
      %c0_20 = arith.constant 0 : index
      %24 = vector.load %arg7[%c0_19, %c0_20] : memref<16x128xf32, #tpu.memory_space<vmem>>, vector<16x128xf32>
      tpu.vector_store %arg7[%c0_19, %c0_20], %23 {strides = array<i32>} : memref<16x128xf32, #tpu.memory_space<vmem>>, vector<16x128xf32>,
    } else {
    }
    return
  }
  func.func @transform_0(%arg0: i32, %arg1: i32) -> (i32, i32) {
    %c0_i32 = arith.constant 0 : i32
    %c0_i32_0 = arith.constant 0 : i32
    return %arg0, %c0_i32 : i32, i32
  }
  func.func @transform_1(%arg0: i32, %arg1: i32) -> (i32, i32) {
    %c0_i32 = arith.constant 0 : i32
    %c0_i32_0 = arith.constant 0 : i32
    return %c0_i32, %arg1 : i32, i32
  }
  func.func @transform_2(%arg0: i32, %arg1: i32) -> (i32, i32) {
    %c0_i32 = arith.constant 0 : i32
    %c0_i32_0 = arith.constant 0 : i32
    return %c0_i32, %arg1 : i32, i32
  }
  func.func @transform_3(%arg0: i32, %arg1: i32) -> (i32, i32) {
    %c0_i32 = arith.constant 0 : i32
    %c0_i32_0 = arith.constant 0 : i32
    return %arg1, %c0_i32 : i32, i32
  }
  func.func @transform_4(%arg0: i32, %arg1: i32) -> (i32, i32) {
    %c0_i32 = arith.constant 0 : i32
    %c0_i32_0 = arith.constant 0 : i32
    %c0_i32_1 = arith.constant 0 : i32
    return %c0_i32, %c0_i32_0 : i32, i32
  }
  func.func @transform_5(%arg0: i32, %arg1: i32) -> (i32, i32) {
    %c0_i32 = arith.constant 0 : i32
    %c0_i32_0 = arith.constant 0 : i32
    return %arg0, %c0_i32 : i32, i32
  }
}

module attributes {stable_mosaic.version = 11 : i64} {
  func.func @classifier_kernel(%arg0: i32, %arg1: i32, %arg2: memref<16x32xf32, #tpu.memory_space<vmem>>, %arg3: memref<32x32xbf16, #tpu.memory_space<vmem>>, %arg4: memref<1x32xf32, #tpu.memory_space<vmem>>, %arg5: memref<32x128xbf16, #tpu.memory_space<vmem>>, %arg6: memref<1x128xf32, #tpu.memory_space<vmem>>, %arg7: memref<16x128xf32, #tpu.memory_space<vmem>>, %arg8: memref<16x128xf32, #tpu.memory_space<vmem>>) attributes {dimension_semantics = [#tpu.dimension_semantics<parallel>, #tpu.dimension_semantics<arbitrary>], iteration_bounds = array<i64: 1, 1>, scalar_prefetch = 0 : i64, scratch_operands = 1 : i64, tpu.core_type = #tpu.core_type<tc>, window_params = [{transform_indices = @transform_0, window_bounds = array<i64: 16, 32>}, {transform_indices = @transform_1, window_bounds = array<i64: 32, 32>}, {transform_indices = @transform_2, window_bounds = array<i64: 1, 32>}, {transform_indices = @transform_3, window_bounds = array<i64: 32, 128>}, {pipeline_mode = #tpu.pipeline_mode<synchronous>, transform_indices = @transform_4, window_bounds = array<i64: 1, 128>}, {transform_indices = @transform_5, window_bounds = array<i64: 16, 128>}]} {
    %c0_i32 = arith.constant 0 : i32
    %0 = arith.cmpi eq, %arg1, %c0_i32 : i32
    %1 = arith.extui %0 : i1 to i32
    %c0_i32_0 = arith.constant 0 : i32
    %2 = arith.cmpi ne, %1, %c0_i32_0 : i32
    scf.if %2 {
      %cst_15 = arith.constant 0.000000e+00 : f32
      %20 = vector.broadcast %cst_15 : f32 to vector<16x128xf32>
      %c0_16 = arith.constant 0 : index
      %c0_17 = arith.constant 0 : index
      %21 = vector.load %arg8[%c0_16, %c0_17] : memref<16x128xf32, #tpu.memory_space<vmem>>, vector<16x128xf32>
      tpu.vector_store %arg8[%c0_16, %c0_17], %20 {strides = array<i32>} : memref<16x128xf32, #tpu.memory_space<vmem>>, vector<16x128xf32>,
    } else {
    }
    %c0 = arith.constant 0 : index
    %c0_1 = arith.constant 0 : index
    %3 = vector.load %arg2[%c0, %c0_1] : memref<16x32xf32, #tpu.memory_space<vmem>>, vector<16x32xf32>
    %4 = arith.truncf %3 : vector<16x32xf32> to vector<16x32xbf16>
    %c0_2 = arith.constant 0 : index
    %c0_3 = arith.constant 0 : index
    %5 = vector.load %arg3[%c0_2, %c0_3] : memref<32x32xbf16, #tpu.memory_space<vmem>>, vector<32x32xbf16>
    %cst = arith.constant dense<0.000000e+00> : vector<16x32xf32>
    %6 = tpu.matmul %4, %5, %cst {dimension_numbers = #tpu.dot_dimension_numbers<[1], [0], [0], [1], [0, 0, 1, 1], [], []>} : vector<16x32xbf16>, vector<32x32xbf16>, vector<16x32xf32> -> vector<16x32xf32>
    %c0_4 = arith.constant 0 : index
    %c0_5 = arith.constant 0 : index
    %7 = vector.load %arg4[%c0_4, %c0_5] : memref<1x32xf32, #tpu.memory_space<vmem>>, vector<1x32xf32>
    %8 = vector.broadcast %7 : vector<1x32xf32> to vector<16x32xf32>
    %9 = arith.addf %6, %8 : vector<16x32xf32>
    %10 = math.tanh %9 : vector<16x32xf32>
    %c0_6 = arith.constant 0 : index
    %c0_7 = arith.constant 0 : index
    %11 = vector.load %arg8[%c0_6, %c0_7] : memref<16x128xf32, #tpu.memory_space<vmem>>, vector<16x128xf32>
    %12 = arith.truncf %10 : vector<16x32xf32> to vector<16x32xbf16>
    %c0_8 = arith.constant 0 : index
    %c0_9 = arith.constant 0 : index
    %13 = vector.load %arg5[%c0_8, %c0_9] : memref<32x128xbf16, #tpu.memory_space<vmem>>, vector<32x128xbf16>
    %cst_10 = arith.constant dense<0.000000e+00> : vector<16x128xf32>
    %14 = tpu.matmul %12, %13, %cst_10 {dimension_numbers = #tpu.dot_dimension_numbers<[1], [0], [0], [1], [0, 0, 1, 1], [], []>} : vector<16x32xbf16>, vector<32x128xbf16>, vector<16x128xf32> -> vector<16x128xf32>
    %15 = arith.addf %11, %14 : vector<16x128xf32>
    %c0_11 = arith.constant 0 : index
    %c0_12 = arith.constant 0 : index
    %16 = vector.load %arg8[%c0_11, %c0_12] : memref<16x128xf32, #tpu.memory_space<vmem>>, vector<16x128xf32>
    tpu.vector_store %arg8[%c0_11, %c0_12], %15 {strides = array<i32>} : memref<16x128xf32, #tpu.memory_space<vmem>>, vector<16x128xf32>,
    %c0_i32_13 = arith.constant 0 : i32
    %17 = arith.cmpi eq, %arg1, %c0_i32_13 : i32
    %18 = arith.extui %17 : i1 to i32
    %c0_i32_14 = arith.constant 0 : i32
    %19 = arith.cmpi ne, %18, %c0_i32_14 : i32
    scf.if %19 {
      %c0_15 = arith.constant 0 : index
      %c0_16 = arith.constant 0 : index
      %20 = vector.load %arg8[%c0_15, %c0_16] : memref<16x128xf32, #tpu.memory_space<vmem>>, vector<16x128xf32>
      %c0_17 = arith.constant 0 : index
      %c0_18 = arith.constant 0 : index
      %21 = vector.load %arg6[%c0_17, %c0_18] : memref<1x128xf32, #tpu.memory_space<vmem>>, vector<1x128xf32>
      %22 = vector.broadcast %21 : vector<1x128xf32> to vector<16x128xf32>
      %23 = arith.addf %20, %22 : vector<16x128xf32>
      %c0_19 = arith.constant 0 : index
      %c0_20 = arith.constant 0 : index
      %24 = vector.load %arg7[%c0_19, %c0_20] : memref<16x128xf32, #tpu.memory_space<vmem>>, vector<16x128xf32>
      tpu.vector_store %arg7[%c0_19, %c0_20], %23 {strides = array<i32>} : memref<16x128xf32, #tpu.memory_space<vmem>>, vector<16x128xf32>,
    } else {
    }
    return
  }
  func.func @transform_0(%arg0: i32, %arg1: i32) -> (i32, i32) {
    %c0_i32 = arith.constant 0 : i32
    %c0_i32_0 = arith.constant 0 : i32
    return %arg0, %c0_i32 : i32, i32
  }
  func.func @transform_1(%arg0: i32, %arg1: i32) -> (i32, i32) {
    %c0_i32 = arith.constant 0 : i32
    %c0_i32_0 = arith.constant 0 : i32
    return %c0_i32, %arg1 : i32, i32
  }
  func.func @transform_2(%arg0: i32, %arg1: i32) -> (i32, i32) {
    %c0_i32 = arith.constant 0 : i32
    %c0_i32_0 = arith.constant 0 : i32
    return %c0_i32, %arg1 : i32, i32
  }
  func.func @transform_3(%arg0: i32, %arg1: i32) -> (i32, i32) {
    %c0_i32 = arith.constant 0 : i32
    %c0_i32_0 = arith.constant 0 : i32
    return %arg1, %c0_i32 : i32, i32
  }
  func.func @transform_4(%arg0: i32, %arg1: i32) -> (i32, i32) {
    %c0_i32 = arith.constant 0 : i32
    %c0_i32_0 = arith.constant 0 : i32
    %c0_i32_1 = arith.constant 0 : i32
    return %c0_i32, %c0_i32_0 : i32, i32
  }
  func.func @transform_5(%arg0: i32, %arg1: i32) -> (i32, i32) {
    %c0_i32 = arith.constant 0 : i32
    %c0_i32_0 = arith.constant 0 : i32
    return %arg0, %c0_i32 : i32, i32
  }
}

</mosaic_0001>

<bundles_post_ra>
// kernel: classifier_forward.1
= control target key start
LH: loop header
LB: loop body
LE: loop exit
PB: predicated region body
PF: predicated region fallthrough
CT: control target
= control target key end

     0   :  { %10 = vsyncpa [#allocation4], 0  ;;  %s393_s0 = inlined_call_operand.hbm [shape: f32[16,32], index: 0, kind: input, shape index: {}]   ;;  %s394_s1 = inlined_call_operand.hbm [shape: bf16[32,32], index: 1, kind: input, shape index: {}]   ;;  %s395_s2 = inlined_call_operand.vmem [shape: f32[1,32], index: 2, kind: input, shape index: {}]   ;;  %s396_s3 = inlined_call_operand.vmem [shape: bf16[32,128], index: 3, kind: input, shape index: {}]   ;;  %s397_s4 = inlined_call_operand.vmem [shape: f32[1,128], index: 4, kind: input, shape index: {}]   ;;  %s398_s5 = inlined_call_operand.vmem [shape: f32[16,128], index: 5, kind: output, shape index: {}]  }
   0x1   :  { %11 = vsyncpa [#allocation6], 0  ;;  %s311_s18 = smov [#allocation3]   ;;  %s263_s22 = scalar_lea.hbm %s393_s0, 256 }
   0x2   :  { %s17_s19 = sshll.u32 %s311_s18, 4  ;;  %p264_p0 = scmp.ne.s32.totalorder %s393_s0, %s263_s22  ;;  %s18_s19 = int_to_ptr.vmem [resolvable:$true] %s17_s19 }
   0x3   :  { %p267_p1 = scmp.lt.u32.totalorder %s263_s22, %s393_s0 }
   0x5   :  { %p269_p2 = pnand %p267_p1, %p264_p0 }
   0x7   :  { %272 = shalt.err (!%p269_p2)
}
   0x8   :  { %s273_s27 = scalar_lea.vmem %s18_s19, 256  ;;  %p278_p4 = scmp.lt.s32.totalorder %s18_s19, %s18_s19 }
   0x9   :  { %p274_p3 = scmp.ne.s32.totalorder %s18_s19, %s273_s27  ;;  %p279_p5 = scmp.lt.s32.totalorder %s273_s27, %s273_s27 }
   0xb   :  { %p280_p6 = por %p279_p5, %p278_p4 }
   0xd   :  { %p281_p7 = pnand %p280_p6, %p274_p3 }
   0xf   :  { %284 = shalt.err (!%p281_p7)
}
  0x10   :  { %s312_s28 = smov 128   ;;  %s313_s29 = smov 8  }
  0x11   :  { %23 = dma.hbm_to_vmem [thread:$0]  %s393_s0, 256, %s18_s19, [#allocation4], %s312_s28, %s312_s28, %s313_s29  }
  0x12   :  { %s314_s7 = smov [#allocation5]   ;;  %s285_s11 = scalar_lea.hbm %s394_s1, 256 }
  0x13   :  { %s29_s8 = sshll.u32 %s314_s7, 4  ;;  %p286_p8 = scmp.ne.s32.totalorder %s394_s1, %s285_s11  ;;  %s30_s8 = int_to_ptr.vmem [resolvable:$true] %s29_s8 }
  0x14   :  { %p289_p9 = scmp.lt.u32.totalorder %s285_s11, %s394_s1 }
  0x16   :  { %p291_p10 = pnand %p289_p9, %p286_p8 }
  0x18   :  { %294 = shalt.err (!%p291_p10)
}
  0x19   :  { %s295_s16 = scalar_lea.vmem %s30_s8, 256  ;;  %p300_p12 = scmp.lt.s32.totalorder %s30_s8, %s30_s8 }
  0x1a   :  { %p296_p11 = scmp.ne.s32.totalorder %s30_s8, %s295_s16  ;;  %p301_p13 = scmp.lt.s32.totalorder %s295_s16, %s295_s16 }
  0x1c   :  { %p302_p0 = por %p301_p13, %p300_p12 }
  0x1e   :  { %p303_p1 = pnand %p302_p0, %p296_p11 }
  0x20   :  { %306 = shalt.err (!%p303_p1)
}
  0x21   :  { %s315_s0 = smov 64   ;;  %s316_s17 = smov 4  }
  0x22   :  { %35 = dma.hbm_to_vmem [thread:$0]  %s394_s1, 256, %s30_s8, [#allocation6], %s315_s0, %s315_s0, %s316_s17  }
  0x23   :  { %307 = dma.done.wait [#allocation4], 256  }
  0x24   :  { %308 = vsyncadd [#allocation4], 4294967040 }
  0x25   :  { %309 = dma.done.wait [#allocation6], 256  }
  0x26   :  { %310 = vsyncadd [#allocation6], 4294967040  ;;  %v317_v0 = vmov 0.0   ;;  %vm318_vm0 = vmmov 0   ;;  %v255_v1 = vld [vmem:[#allocation5] sm:$0xff]   ;;  %v256_v2 = vld [vmem:[#allocation5 + $0x8] sm:$0xff]  }
  0x27   :  { %231 = vmatprep.subr.bf16.mxu0 %v317_v0  ;;  %235 = vmatprep.mubr.msk.bf16.mxu0 %vm318_vm0, %v317_v0  ;;  %v55_v3 = vld [vmem:[#allocation3] sm:$0xff]  ;;  %v56_v4 = vld [vmem:[#allocation3 + $0x8] sm:$0xff]  ;;  %vm81_vm1 = vcmask 261120  }
  0x28   :  { %239 = vmatprep.subr.bf16.mxu1 %v317_v0  ;;  %243 = vmatprep.mubr.msk.bf16.mxu1 %vm318_vm0, %v317_v0  ;;  %v57_v5 = vpack.c.bf16 %v56_v4, %v55_v3  ;;  %v257_v6 = vld [vmem:[%s396_s3] sm:$0xff]   ;;  %v258_v7 = vld [vmem:[%s396_s3 + $0x8] sm:$0xff]  }
  0x29   :  { %232 = vmatpush3.bf16.msra.mxu0 %v255_v1  ;;  %240 = vmatpush3.bf16.msra.mxu1 %v257_v6  ;;  %v217_v8 = vld [vmem:[%s395_s2] ss:$0 sm:$0xff] }
  0x2a   :  { %233 = vmatprep.subr.bf16.mxu0 %v317_v0  ;;  %241 = vmatprep.subr.bf16.mxu1 %v317_v0  ;;  %v224_v18 = vld [vmem:[%s397_s4] ss:$0 sm:$0xff] }
  0x2d   :  { %234 = vmatpush3.bf16.msra.mxu0 %v256_v2  ;;  %242 = vmatpush3.bf16.msra.mxu1 %v258_v7 }
  0x30   :  { %236 = vmatmul.mubr.msk.bf16.vlgmr.msra.gmra.mrb[0].mxu0 %vm81_vm1, %v57_v5 }
 0x103   :  { %v119_v9 = vpop.f32.mrb[0].mxu0 }
 0x104   :  { %v120_v10 = vadd.f32 %v217_v8, %v119_v9  ;;  %v237_v11 = vpop.f32.mrb[1].mxu0 }
 0x105   :  { %v122_v12 = vpop.f32.mrb[2].mxu0 }
 0x106   :  { %v123_v13 = vadd.f32 %v217_v8, %v122_v12  ;;  %v238_v14 = vpop.f32.mrb[3].mxu0  ;;  %259 = vtanh.f32 %v120_v10 }
 0x108   :  { %261 = vtanh.f32 %v123_v13 }
 0x110   :  { %v260_v15 = vpop.eup %259 }
 0x112   :  { %v262_v16 = vpop.eup %261 }
 0x113   :  { %v130_v17 = vpack.c.bf16 %v262_v16, %v260_v15 }
 0x115   :  { %244 = vmatmul.mubr.msk.bf16.vlgmr.msra.gmra.mrb[0].mxu1 %vm81_vm1, %v130_v17 }
 0x1e8   :  { %v184_v19 = vpop.f32.mrb[0].mxu1 }
 0x1e9   :  { %v207_v20 = vadd.f32 %v224_v18, %v184_v19  ;;  %v245_v21 = vpop.f32.mrb[1].mxu1 }
 0x1ea   :  { %v187_v22 = vpop.f32.mrb[2].mxu1 }
 0x1eb   :  { %209 = vst [vmem:[%s398_s5] sm:$0xff] %v207_v20  ;;  %v208_v23 = vadd.f32 %v224_v18, %v187_v22  ;;  %v246_v24 = vpop.f32.mrb[3].mxu1 }
 0x1ed   :  { %210 = vst [vmem:[%s398_s5 + $0x8] sm:$0xff] %v208_v23 }
 0x1ee   :  { %215 = vsyncpa [#allocation4], 1 }
 0x1ef   :  { %216 = vsyncpa [#allocation6], 1 }

// kernel: classifier_forward.1
= control target key start
LH: loop header
LB: loop body
LE: loop exit
PB: predicated region body
PF: predicated region fallthrough
CT: control target
= control target key end

     0   :  { %10 = vsyncpa [#allocation4], 0  ;;  %s393_s0 = inlined_call_operand.hbm [shape: f32[16,32], index: 0, kind: input, shape index: {}]   ;;  %s394_s1 = inlined_call_operand.hbm [shape: bf16[32,32], index: 1, kind: input, shape index: {}]   ;;  %s395_s2 = inlined_call_operand.vmem [shape: f32[1,32], index: 2, kind: input, shape index: {}]   ;;  %s396_s3 = inlined_call_operand.vmem [shape: bf16[32,128], index: 3, kind: input, shape index: {}]   ;;  %s397_s4 = inlined_call_operand.vmem [shape: f32[1,128], index: 4, kind: input, shape index: {}]   ;;  %s398_s5 = inlined_call_operand.vmem [shape: f32[16,128], index: 5, kind: output, shape index: {}]  }
   0x1   :  { %11 = vsyncpa [#allocation6], 0  ;;  %s311_s18 = smov [#allocation3]   ;;  %s263_s22 = scalar_lea.hbm %s393_s0, 256 }
   0x2   :  { %s17_s19 = sshll.u32 %s311_s18, 4  ;;  %p264_p0 = scmp.ne.s32.totalorder %s393_s0, %s263_s22  ;;  %s18_s19 = int_to_ptr.vmem [resolvable:$true] %s17_s19 }
   0x3   :  { %p267_p1 = scmp.lt.u32.totalorder %s263_s22, %s393_s0 }
   0x5   :  { %p269_p2 = pnand %p267_p1, %p264_p0 }
   0x7   :  { %272 = shalt.err (!%p269_p2)
}
   0x8   :  { %s273_s27 = scalar_lea.vmem %s18_s19, 256  ;;  %p278_p4 = scmp.lt.s32.totalorder %s18_s19, %s18_s19 }
   0x9   :  { %p274_p3 = scmp.ne.s32.totalorder %s18_s19, %s273_s27  ;;  %p279_p5 = scmp.lt.s32.totalorder %s273_s27, %s273_s27 }
   0xb   :  { %p280_p6 = por %p279_p5, %p278_p4 }
   0xd   :  { %p281_p7 = pnand %p280_p6, %p274_p3 }
   0xf   :  { %284 = shalt.err (!%p281_p7)
}
  0x10   :  { %s312_s28 = smov 128   ;;  %s313_s29 = smov 8  }
  0x11   :  { %23 = dma.hbm_to_vmem [thread:$0]  %s393_s0, 256, %s18_s19, [#allocation4], %s312_s28, %s312_s28, %s313_s29  }
  0x12   :  { %s314_s7 = smov [#allocation5]   ;;  %s285_s11 = scalar_lea.hbm %s394_s1, 256 }
  0x13   :  { %s29_s8 = sshll.u32 %s314_s7, 4  ;;  %p286_p8 = scmp.ne.s32.totalorder %s394_s1, %s285_s11  ;;  %s30_s8 = int_to_ptr.vmem [resolvable:$true] %s29_s8 }
  0x14   :  { %p289_p9 = scmp.lt.u32.totalorder %s285_s11, %s394_s1 }
  0x16   :  { %p291_p10 = pnand %p289_p9, %p286_p8 }
  0x18   :  { %294 = shalt.err (!%p291_p10)
}
  0x19   :  { %s295_s16 = scalar_lea.vmem %s30_s8, 256  ;;  %p300_p12 = scmp.lt.s32.totalorder %s30_s8, %s30_s8 }
  0x1a   :  { %p296_p11 = scmp.ne.s32.totalorder %s30_s8, %s295_s16  ;;  %p301_p13 = scmp.lt.s32.totalorder %s295_s16, %s295_s16 }
  0x1c   :  { %p302_p0 = por %p301_p13, %p300_p12 }
  0x1e   :  { %p303_p1 = pnand %p302_p0, %p296_p11 }
  0x20   :  { %306 = shalt.err (!%p303_p1)
}
  0x21   :  { %s315_s0 = smov 64   ;;  %s316_s17 = smov 4  }
  0x22   :  { %35 = dma.hbm_to_vmem [thread:$0]  %s394_s1, 256, %s30_s8, [#allocation6], %s315_s0, %s315_s0, %s316_s17  }
  0x23   :  { %307 = dma.done.wait [#allocation4], 256  }
  0x24   :  { %308 = vsyncadd [#allocation4], 4294967040 }
  0x25   :  { %309 = dma.done.wait [#allocation6], 256  }
  0x26   :  { %310 = vsyncadd [#allocation6], 4294967040  ;;  %v317_v0 = vmov 0.0   ;;  %vm318_vm0 = vmmov 0   ;;  %v255_v1 = vld [vmem:[#allocation5] sm:$0xff]   ;;  %v256_v2 = vld [vmem:[#allocation5 + $0x8] sm:$0xff]  }
  0x27   :  { %231 = vmatprep.subr.bf16.mxu0 %v317_v0  ;;  %235 = vmatprep.mubr.msk.bf16.mxu0 %vm318_vm0, %v317_v0  ;;  %v55_v3 = vld [vmem:[#allocation3] sm:$0xff]  ;;  %v56_v4 = vld [vmem:[#allocation3 + $0x8] sm:$0xff]  ;;  %vm81_vm1 = vcmask 261120  }
  0x28   :  { %239 = vmatprep.subr.bf16.mxu1 %v317_v0  ;;  %243 = vmatprep.mubr.msk.bf16.mxu1 %vm318_vm0, %v317_v0  ;;  %v57_v5 = vpack.c.bf16 %v56_v4, %v55_v3  ;;  %v257_v6 = vld [vmem:[%s396_s3] sm:$0xff]   ;;  %v258_v7 = vld [vmem:[%s396_s3 + $0x8] sm:$0xff]  }
  0x29   :  { %232 = vmatpush3.bf16.msra.mxu0 %v255_v1  ;;  %240 = vmatpush3.bf16.msra.mxu1 %v257_v6  ;;  %v217_v8 = vld [vmem:[%s395_s2] ss:$0 sm:$0xff] }
  0x2a   :  { %233 = vmatprep.subr.bf16.mxu0 %v317_v0  ;;  %241 = vmatprep.subr.bf16.mxu1 %v317_v0  ;;  %v224_v18 = vld [vmem:[%s397_s4] ss:$0 sm:$0xff] }
  0x2d   :  { %234 = vmatpush3.bf16.msra.mxu0 %v256_v2  ;;  %242 = vmatpush3.bf16.msra.mxu1 %v258_v7 }
  0x30   :  { %236 = vmatmul.mubr.msk.bf16.vlgmr.msra.gmra.mrb[0].mxu0 %vm81_vm1, %v57_v5 }
 0x103   :  { %v119_v9 = vpop.f32.mrb[0].mxu0 }
 0x104   :  { %v120_v10 = vadd.f32 %v217_v8, %v119_v9  ;;  %v237_v11 = vpop.f32.mrb[1].mxu0 }
 0x105   :  { %v122_v12 = vpop.f32.mrb[2].mxu0 }
 0x106   :  { %v123_v13 = vadd.f32 %v217_v8, %v122_v12  ;;  %v238_v14 = vpop.f32.mrb[3].mxu0  ;;  %259 = vtanh.f32 %v120_v10 }
 0x108   :  { %261 = vtanh.f32 %v123_v13 }
 0x110   :  { %v260_v15 = vpop.eup %259 }
 0x112   :  { %v262_v16 = vpop.eup %261 }
 0x113   :  { %v130_v17 = vpack.c.bf16 %v262_v16, %v260_v15 }
 0x115   :  { %244 = vmatmul.mubr.msk.bf16.vlgmr.msra.gmra.mrb[0].mxu1 %vm81_vm1, %v130_v17 }
 0x1e8   :  { %v184_v19 = vpop.f32.mrb[0].mxu1 }
 0x1e9   :  { %v207_v20 = vadd.f32 %v224_v18, %v184_v19  ;;  %v245_v21 = vpop.f32.mrb[1].mxu1 }
 0x1ea   :  { %v187_v22 = vpop.f32.mrb[2].mxu1 }
 0x1eb   :  { %209 = vst [vmem:[%s398_s5] sm:$0xff] %v207_v20  ;;  %v208_v23 = vadd.f32 %v224_v18, %v187_v22  ;;  %v246_v24 = vpop.f32.mrb[3].mxu1 }
 0x1ed   :  { %210 = vst [vmem:[%s398_s5 + $0x8] sm:$0xff] %v208_v23 }
 0x1ee   :  { %215 = vsyncpa [#allocation4], 1 }
 0x1ef   :  { %216 = vsyncpa [#allocation6], 1 }

</bundles_post_ra>
